<compile_context>
chip_gen: v7x
topology: tpu7x:2x2x1
jax: 0.10.0
libtpu: 0.0.40
codegen_flags: <defaults>
</compile_context>

<pallas_src>
from typing import Any, Callable, Dict

import jax
import jax.numpy as jnp
from jax.experimental import pallas as pl
from jax.experimental.pallas import tpu as pltpu


def _cdiv(a: int, b: int) -> int:
  return -(-a // b)


def _round_up(x: int, m: int) -> int:
  return _cdiv(x, m) * m


def _choose_tiling(dim: int, align: int, preferred: int):
  """Split `dim` (padded to `align`) into the fewest `align`-multiple tiles of
  size <= max(preferred, align), distributing the padding across blocks rather
  than rounding the whole dim up to a preferred-tile multiple.

  Returns (tile, padded_dim, num_blocks)."""
  preferred = max(preferred, align)
  dmin = _round_up(dim, align)
  nblk = _cdiv(dmin, preferred)
  tile = _round_up(_cdiv(dmin, nblk), align)
  return tile, tile * nblk, nblk


def _vmem_limit_bytes() -> int:
  """Generation-aware scoped-VMEM budget: v7x has 64 MiB/TC, v5e/v6e 128 MiB."""
  try:
    cap = int(pltpu.get_tpu_info().vmem_capacity_bytes)
  except Exception:
    return 40 * 1024 * 1024  # conservative fallback (fits every generation)
  if cap <= 64 * 1024 * 1024:
    return 40 * 1024 * 1024   # v7x
  return 100 * 1024 * 1024    # v5e / v6e


# ----------------------------------------------------------------------------
# Pallas kernel: tiled  y = (x @ W + b) * scale
#   grid = (M/tm, N/tn, K/tk); the f32 output block is resident across the
#   innermost K axis and used directly as the accumulator; bias + scale are
#   applied (in f32) only on the last K step.
# ----------------------------------------------------------------------------
def _matmul_bias_scale_kernel(scale_ref, x_ref, w_ref, b_ref, o_ref):
  k = pl.program_id(2)

  @pl.when(k == 0)
  def _init():
    o_ref[...] = jnp.zeros_like(o_ref)

  o_ref[...] += jnp.dot(
      x_ref[...], w_ref[...], preferred_element_type=jnp.float32
  )

  @pl.when(k == pl.num_programs(2) - 1)
  def _finalize():
    # Keep the epilogue in f32 (v5e has no bf16 VPU path).
    o_ref[...] = (o_ref[...] + b_ref[...]) * scale_ref[0]


def linear_bias_scale(x, w, b, scale, *, tm=512, tn=512, tk=1024):
  """x: [T, H], w: [H, O] (f32 or bf16), b: [1, O], scale: runtime scalar.

  Returns f32 [T, O] = (x @ w + b) * scale (bf16 MXU operands, f32 accumulate).
  """
  T, H = x.shape
  H2, O = w.shape
  assert H == H2 and b.shape == (1, O)

  # M maps to the sublane axis: align to 16 (bf16 x packing; covers the f32
  # output's 8).  N and K map to lanes: align to 128.
  tm, Mp, gm = _choose_tiling(T, 16, tm)
  tn, Np, gn = _choose_tiling(O, 128, tn)
  tk, Kp, gk = _choose_tiling(H, 128, tk)

  # v7x has 2 TensorCores; guarantee >= 2 blocks on a "parallel" axis when the
  # shape allows it, so the second core is not idle.  Costs one extra pipeline
  # step (~0.35 us) on single-core generations — negligible.
  if gm == 1 and gn == 1:
    if Mp >= 32:
      gm = 2
      tm = _round_up(_cdiv(Mp, 2), 16)
      Mp = gm * tm
    elif Np >= 256:
      gn = 2
      tn = _round_up(_cdiv(Np, 2), 128)
      Np = gn * tn

  # bf16 operands (MXU-native).  K zero-padding is exact for the reduction;
  # M/N padding is sliced off below.
  xp = x.astype(jnp.bfloat16)
  if (Mp, Kp) != (T, H):
    xp = jnp.pad(xp, ((0, Mp - T), (0, Kp - H)))
  wp = w if w.dtype == jnp.bfloat16 else w.astype(jnp.bfloat16)
  if (Kp, Np) != (H, O):
    wp = jnp.pad(wp, ((0, Kp - H), (0, Np - O)))
  bp = b.astype(jnp.float32)
  if Np != O:
    bp = jnp.pad(bp, ((0, 0), (0, Np - O)))
  # Runtime scalar in SMEM -> no retrace/recompile when `scale` changes.
  scale_arr = jnp.asarray(scale, jnp.float32).reshape(1)

  grid = (gm, gn, gk)
  flops = 2 * Mp * Kp * Np
  # Under the (i, j, k) grid order x is streamed gn times and W gm times.
  bytes_accessed = (xp.size * 2 * gn + wp.size * 2 * gm + bp.size * 4
                    + Mp * Np * 4)

  out = pl.pallas_call(
      _matmul_bias_scale_kernel,
      out_shape=jax.ShapeDtypeStruct((Mp, Np), jnp.float32),
      grid_spec=pltpu.PrefetchScalarGridSpec(
          num_scalar_prefetch=0,
          grid=grid,
          in_specs=[
              pl.BlockSpec(memory_space=pltpu.MemorySpace.SMEM),  # scale (1,)
              pl.BlockSpec((tm, tk), lambda i, j, k: (i, k)),     # x tile
              pl.BlockSpec((tk, tn), lambda i, j, k: (k, j)),     # w tile
              pl.BlockSpec((1, tn), lambda i, j, k: (0, j)),      # bias tile
          ],
          out_specs=pl.BlockSpec((tm, tn), lambda i, j, k: (i, j)),
      ),
      compiler_params=pltpu.CompilerParams(
          # M/N shardable across TensorCores; K is the accumulation axis and
          # must stay "arbitrary" (innermost) for the resident-output pattern.
          dimension_semantics=("parallel", "parallel", "arbitrary"),
          vmem_limit_bytes=_vmem_limit_bytes(),
      ),
      cost_estimate=pl.CostEstimate(
          flops=flops, transcendentals=0, bytes_accessed=bytes_accessed
      ),
  )(scale_arr, xp, wp, bp)

  return out[:T, :O]


# ----------------------------------------------------------------------------
# Inner module (the thing ExportableModule wraps) — Pallas-backed linear.
# ----------------------------------------------------------------------------
class PallasLinear:
  """Representative inner module: y = (x @ W + b) * scale."""

  def __init__(self, hidden: int, out: int):
    kw, kb = jax.random.split(jax.random.PRNGKey(42))
    # Cast weights to bf16 once at construction (not per call) — avoids a full
    # HBM f32-read + bf16-write of the weight matrix on every forward.
    self.w = (jax.random.normal(kw, (hidden, out), jnp.float32) * 0.02
              ).astype(jnp.bfloat16)
    self.b = jax.random.normal(kb, (1, out), jnp.float32) * 0.01

  def __call__(self, x, *, scale: float = 1.0):
    # x: [B, S, H] -> flatten batch/seq (glue), run the Pallas hot path.
    B, S, H = x.shape
    y2d = linear_bias_scale(x.reshape(B * S, H), self.w, self.b, scale)
    return y2d.reshape(B, S, self.w.shape[1])


# ----------------------------------------------------------------------------
# ExportableModule — exact forward-pass semantics of the PyTorch wrapper.
# (Pure Python kwarg-merging glue; no compute of its own.)
# ----------------------------------------------------------------------------
class ExportableModule:

  def __init__(self, module: Callable, **extra_kwargs: Any):
    self.module = module
    self.extra_kwargs: Dict[str, Any] = extra_kwargs

  def __call__(self, *export_args, **export_kwargs):
    # Same merge order as the PyTorch module: extra_kwargs override call kwargs.
    full_kwargs = {**export_kwargs, **self.extra_kwargs}
    return self.module(*export_args, **full_kwargs)


# ----------------------------------------------------------------------------
# Demo / smoke test
# ----------------------------------------------------------------------------
if __name__ == "__main__":
  B, S, H, O = 2, 8, 32, 32  # small shapes consistent with a generative stack

  key = jax.random.PRNGKey(0)
  x = jax.random.normal(key, (B, S, H), jnp.float32)

  inner = PallasLinear(hidden=H, out=O)
  # extra_kwargs delivered through the ExportableModule path (as in converter).
  exportable = ExportableModule(inner, scale=0.5)

  y = exportable(x)                     # forward(*export_args, **export_kwargs)
  y = jax.block_until_ready(y)

  # Reference with the same bf16 operand rounding as the kernel (f32 accumulate).
  xb = x.reshape(B * S, H).astype(jnp.bfloat16).astype(jnp.float32)
  wb = inner.w.astype(jnp.float32)
  y_ref = (jnp.dot(xb, wb, precision=jax.lax.Precision.HIGHEST) + inner.b) * 0.5
  y_ref = y_ref.reshape(B, S, O)
  assert y.shape == (B, S, O)
  assert jnp.allclose(y, y_ref, atol=1e-4, rtol=1e-4)

  # Also exercise the multi-tile (M, N, K) path: non-tile-multiple M (160 ->
  # tm=80 blocks, no 128-padding on M) and a 3-step K accumulation into the
  # resident output block.
  kx, kw2, kb2 = jax.random.split(jax.random.PRNGKey(1), 3)
  T2, H2, O2 = 160, 384, 256
  x2 = jax.random.normal(kx, (T2, H2), jnp.float32)
  w2 = jax.random.normal(kw2, (H2, O2), jnp.float32) * 0.02
  b2 = jax.random.normal(kb2, (1, O2), jnp.float32) * 0.01
  y2 = jax.block_until_ready(
      linear_bias_scale(x2, w2, b2, 0.25, tm=128, tn=128, tk=128))
  x2b = x2.astype(jnp.bfloat16).astype(jnp.float32)
  w2b = w2.astype(jnp.bfloat16).astype(jnp.float32)
  y2_ref = (jnp.dot(x2b, w2b, precision=jax.lax.Precision.HIGHEST) + b2) * 0.25
  assert y2.shape == (T2, O2)
  assert jnp.allclose(y2, y2_ref, atol=1e-3, rtol=1e-3)

  print("KERNEL_OK")
</pallas_src>

<mosaic_0001>
module attributes {stable_mosaic.version = 11 : i64} {
  func.func @_matmul_bias_scale_kernel(%arg0: i32, %arg1: i32, %arg2: i32, %arg3: memref<1xf32, #tpu.memory_space<smem>>, %arg4: memref<16x128xbf16, #tpu.memory_space<vmem>>, %arg5: memref<128x128xbf16, #tpu.memory_space<vmem>>, %arg6: memref<1x128xf32, #tpu.memory_space<vmem>>, %arg7: memref<16x128xf32, #tpu.memory_space<vmem>>) attributes {dimension_semantics = [#tpu.dimension_semantics<parallel>, #tpu.dimension_semantics<parallel>, #tpu.dimension_semantics<arbitrary>], iteration_bounds = array<i64: 1, 1, 1>, scalar_prefetch = 0 : i64, scratch_operands = 0 : i64, tpu.core_type = #tpu.core_type<tc>, window_params = [{transform_indices = @transform_0, window_bounds = array<i64: 1>}, {transform_indices = @transform_1, window_bounds = array<i64: 16, 128>}, {transform_indices = @transform_2, window_bounds = array<i64: 128, 128>}, {transform_indices = @transform_3, window_bounds = array<i64: 1, 128>}, {transform_indices = @transform_4, window_bounds = array<i64: 16, 128>}]} {
    %c0_i32 = arith.constant 0 : i32
    %0 = arith.cmpi eq, %arg2, %c0_i32 : i32
    %1 = arith.extui %0 : i1 to i32
    %c0_i32_0 = arith.constant 0 : i32
    %2 = arith.cmpi ne, %1, %c0_i32_0 : i32
    scf.if %2 {
      %cst_10 = arith.constant 0.000000e+00 : f32
      %12 = vector.broadcast %cst_10 : f32 to vector<16x128xf32>
      %c0_11 = arith.constant 0 : index
      %c0_12 = arith.constant 0 : index
      %13 = vector.load %arg7[%c0_11, %c0_12] : memref<16x128xf32, #tpu.memory_space<vmem>>, vector<16x128xf32>
      tpu.vector_store %arg7[%c0_11, %c0_12], %12 {strides = array<i32>} : memref<16x128xf32, #tpu.memory_space<vmem>>, vector<16x128xf32>,
    } else {
    }
    %c0 = arith.constant 0 : index
    %c0_1 = arith.constant 0 : index
    %3 = vector.load %arg7[%c0, %c0_1] : memref<16x128xf32, #tpu.memory_space<vmem>>, vector<16x128xf32>
    %c0_2 = arith.constant 0 : index
    %c0_3 = arith.constant 0 : index
    %4 = vector.load %arg4[%c0_2, %c0_3] : memref<16x128xbf16, #tpu.memory_space<vmem>>, vector<16x128xbf16>
    %c0_4 = arith.constant 0 : index
    %c0_5 = arith.constant 0 : index
    %5 = vector.load %arg5[%c0_4, %c0_5] : memref<128x128xbf16, #tpu.memory_space<vmem>>, vector<128x128xbf16>
    %cst = arith.constant dense<0.000000e+00> : vector<16x128xf32>
    %6 = tpu.matmul %4, %5, %cst {dimension_numbers = #tpu.dot_dimension_numbers<[1], [0], [0], [1], [0, 0, 1, 1], [], []>} : vector<16x128xbf16>, vector<128x128xbf16>, vector<16x128xf32> -> vector<16x128xf32>
    %7 = arith.addf %3, %6 : vector<16x128xf32>
    %c0_6 = arith.constant 0 : index
    %c0_7 = arith.constant 0 : index
    %8 = vector.load %arg7[%c0_6, %c0_7] : memref<16x128xf32, #tpu.memory_space<vmem>>, vector<16x128xf32>
    tpu.vector_store %arg7[%c0_6, %c0_7], %7 {strides = array<i32>} : memref<16x128xf32, #tpu.memory_space<vmem>>, vector<16x128xf32>,
    %c0_i32_8 = arith.constant 0 : i32
    %9 = arith.cmpi eq, %arg2, %c0_i32_8 : i32
    %10 = arith.extui %9 : i1 to i32
    %c0_i32_9 = arith.constant 0 : i32
    %11 = arith.cmpi ne, %10, %c0_i32_9 : i32
    scf.if %11 {
      %c0_10 = arith.constant 0 : index
      %c0_11 = arith.constant 0 : index
      %12 = vector.load %arg7[%c0_10, %c0_11] : memref<16x128xf32, #tpu.memory_space<vmem>>, vector<16x128xf32>
      %c0_12 = arith.constant 0 : index
      %c0_13 = arith.constant 0 : index
      %13 = vector.load %arg6[%c0_12, %c0_13] : memref<1x128xf32, #tpu.memory_space<vmem>>, vector<1x128xf32>
      %14 = vector.broadcast %13 : vector<1x128xf32> to vector<16x128xf32>
      %15 = arith.addf %12, %14 : vector<16x128xf32>
      %c0_14 = arith.constant 0 : index
      %16 = memref.load %arg3[%c0_14] : memref<1xf32, #tpu.memory_space<smem>>
      %17 = vector.broadcast %16 : f32 to vector<16x128xf32>
      %18 = arith.mulf %15, %17 : vector<16x128xf32>
      %c0_15 = arith.constant 0 : index
      %c0_16 = arith.constant 0 : index
      %19 = vector.load %arg7[%c0_15, %c0_16] : memref<16x128xf32, #tpu.memory_space<vmem>>, vector<16x128xf32>
      tpu.vector_store %arg7[%c0_15, %c0_16], %18 {strides = array<i32>} : memref<16x128xf32, #tpu.memory_space<vmem>>, vector<16x128xf32>,
    } else {
    }
    return
  }
  func.func @transform_0(%arg0: i32, %arg1: i32, %arg2: i32) -> i32 {
    %c0_i32 = arith.constant 0 : i32
    %c0_i32_0 = arith.constant 0 : i32
    return %c0_i32 : i32
  }
  func.func @transform_1(%arg0: i32, %arg1: i32, %arg2: i32) -> (i32, i32) {
    %c0_i32 = arith.constant 0 : i32
    return %arg0, %arg2 : i32, i32
  }
  func.func @transform_2(%arg0: i32, %arg1: i32, %arg2: i32) -> (i32, i32) {
    %c0_i32 = arith.constant 0 : i32
    return %arg2, %arg1 : i32, i32
  }
  func.func @transform_3(%arg0: i32, %arg1: i32, %arg2: i32) -> (i32, i32) {
    %c0_i32 = arith.constant 0 : i32
    %c0_i32_0 = arith.constant 0 : i32
    return %c0_i32, %arg1 : i32, i32
  }
  func.func @transform_4(%arg0: i32, %arg1: i32, %arg2: i32) -> (i32, i32) {
    %c0_i32 = arith.constant 0 : i32
    return %arg0, %arg1 : i32, i32
  }
}

</mosaic_0001>

<bundles_post_ra>
// kernel: tpu_custom_call.1
= control target key start
LH: loop header
LB: loop body
LE: loop exit
PB: predicated region body
PF: predicated region fallthrough
CT: control target
= control target key end

     0   :  { %10 = vsyncpa [#allocation4], 0  ;;  %s416_s0 = inlined_call_operand.<no memory space> [shape: f32[1], index: 0, kind: input, shape index: {}]   ;;  %s417_s1 = inlined_call_operand.hbm [shape: bf16[16,128], index: 1, kind: input, shape index: {}]   ;;  %s418_s2 = inlined_call_operand.hbm [shape: bf16[128,128], index: 2, kind: input, shape index: {}]   ;;  %s419_s3 = inlined_call_operand.vmem [shape: f32[1,128], index: 3, kind: input, shape index: {}]   ;;  %s420_s4 = inlined_call_operand.hbm [shape: f32[16,128], index: 4, kind: output, shape index: {}]  }
   0x1   :  { %11 = vsyncpa [#allocation7], 0 }
   0x2   :  { %12 = vsyncpa [#allocation5], 0  ;;  %s340_s15 = smov [#allocation3]   ;;  %s268_s19 = scalar_lea.hbm %s417_s1, 128 }
   0x3   :  { %s20_s16 = sshll.u32 %s340_s15, 4  ;;  %p269_p0 = scmp.ne.s32.totalorder %s417_s1, %s268_s19  ;;  %s21_s16 = int_to_ptr.vmem [resolvable:$true] %s20_s16 }
   0x4   :  { %p272_p1 = scmp.lt.u32.totalorder %s268_s19, %s417_s1 }
   0x6   :  { %p274_p2 = pnand %p272_p1, %p269_p0 }
   0x8   :  { %277 = shalt.err (!%p274_p2)
}
   0x9   :  { %s278_s24 = scalar_lea.vmem %s21_s16, 128  ;;  %p283_p4 = scmp.lt.s32.totalorder %s21_s16, %s21_s16 }
   0xa   :  { %p279_p3 = scmp.ne.s32.totalorder %s21_s16, %s278_s24  ;;  %p284_p5 = scmp.lt.s32.totalorder %s278_s24, %s278_s24 }
   0xc   :  { %p285_p6 = por %p284_p5, %p283_p4 }
   0xe   :  { %p286_p7 = pnand %p285_p6, %p279_p3 }
  0x10   :  { %289 = shalt.err (!%p286_p7)
}
  0x11   :  { %s341_s25 = smov 64   ;;  %s342_s26 = smov 4  }
  0x12   :  { %26 = dma.hbm_to_vmem [thread:$0]  %s417_s1, 128, %s21_s16, [#allocation4], %s341_s25, %s341_s25, %s342_s26  }
  0x13   :  { %s343_s29 = smov [#allocation6]   ;;  %s290_s7 = scalar_lea.hbm %s418_s2, 1024 }
  0x14   :  { %s32_s30 = sshll.u32 %s343_s29, 4  ;;  %p291_p8 = scmp.ne.s32.totalorder %s418_s2, %s290_s7  ;;  %s33_s30 = int_to_ptr.vmem [resolvable:$true] %s32_s30 }
  0x15   :  { %p294_p9 = scmp.lt.u32.totalorder %s290_s7, %s418_s2 }
  0x17   :  { %p296_p10 = pnand %p294_p9, %p291_p8 }
  0x19   :  { %299 = shalt.err (!%p296_p10)
}
  0x1a   :  { %s300_s12 = scalar_lea.vmem %s33_s30, 1024  ;;  %p305_p12 = scmp.lt.s32.totalorder %s33_s30, %s33_s30 }
  0x1b   :  { %p301_p11 = scmp.ne.s32.totalorder %s33_s30, %s300_s12  ;;  %p306_p13 = scmp.lt.s32.totalorder %s300_s12, %s300_s12 }
  0x1d   :  { %p307_p0 = por %p306_p13, %p305_p12 }
  0x1f   :  { %p308_p1 = pnand %p307_p0, %p301_p11 }
  0x21   :  { %311 = shalt.err (!%p308_p1)
}
  0x22   :  { %38 = dma.hbm_to_vmem [thread:$0]  %s418_s2, 1024, %s33_s30, [#allocation7], %s341_s25, %s341_s25, %s342_s26  }
  0x23   :  { %334 = dma.done.wait [#allocation4], 128  }
  0x24   :  { %335 = vsyncadd [#allocation4], 4294967168 }
  0x25   :  { %336 = dma.done.wait [#allocation7], 1024  }
  0x26   :  { %337 = vsyncadd [#allocation7], 4294966272  ;;  %v344_v0 = vmov 0.0   ;;  %vm345_vm0 = vmmov 0   ;;  %v259_v1 = vld [vmem:[#allocation6] sm:$0xff]   ;;  %v260_v2 = vld [vmem:[#allocation6 + $0x8] sm:$0xff]   ;;  %v188_v14 = vstv %s416_s0 }
  0x27   :  { %230 = vmatprep.subr.bf16.mxu0 %v344_v0  ;;  %246 = vmatprep.mubr.msk.bf16.mxu0 %vm345_vm0, %v344_v0  ;;  %v261_v3 = vld [vmem:[#allocation6 + $0x10] sm:$0xff]   ;;  %v262_v4 = vld [vmem:[#allocation6 + $0x18] sm:$0xff]   ;;  %v263_v5 = vld [vmem:[#allocation6 + $0x20] sm:$0xff]   ;;  %s346_s17 = smov [#allocation8]  }
  0x28   :  { %231 = vmatpush3.bf16.msra.mxu0 %v259_v1  ;;  %v264_v6 = vld [vmem:[#allocation6 + $0x28] sm:$0xff]   ;;  %v265_v7 = vld [vmem:[#allocation6 + $0x30] sm:$0xff]   ;;  %v266_v8 = vld [vmem:[#allocation6 + $0x38] sm:$0xff]   ;;  %s198_s18 = sshll.u32 %s346_s17, 4  ;;  %s199_s18 = int_to_ptr.vmem [resolvable:$true] %s198_s18 }
  0x29   :  { %232 = vmatprep.subr.bf16.mxu0 %v344_v0  ;;  %v267_v9 = vld [vmem:[#allocation3] sm:$0xff]   ;;  %s312_s19 = scalar_lea.vmem %s199_s18, 256  ;;  %p317_p3 = scmp.lt.s32.totalorder %s199_s18, %s199_s18 }
  0x2a   :  { %v220_v11 = vld [vmem:[%s419_s3] ss:$0 sm:$0xff]  ;;  %p313_p2 = scmp.ne.s32.totalorder %s199_s18, %s312_s19  ;;  %p318_p4 = scmp.lt.s32.totalorder %s312_s19, %s312_s19 }
  0x2c   :  { %233 = vmatpush3.bf16.msra.mxu0 %v260_v2  ;;  %p319_p5 = por %p318_p4, %p317_p3 }
  0x2d   :  { %234 = vmatprep.subr.bf16.mxu0 %v344_v0 }
  0x2e   :  { %p320_p6 = pnand %p319_p5, %p313_p2 }
  0x30   :  { %235 = vmatpush3.bf16.msra.mxu0 %v261_v3 }
  0x31   :  { %236 = vmatprep.subr.bf16.mxu0 %v344_v0 }
  0x34   :  { %237 = vmatpush3.bf16.msra.mxu0 %v262_v4 }
  0x35   :  { %238 = vmatprep.subr.bf16.mxu0 %v344_v0 }
  0x38   :  { %239 = vmatpush3.bf16.msra.mxu0 %v263_v5 }
  0x39   :  { %240 = vmatprep.subr.bf16.mxu0 %v344_v0 }
  0x3c   :  { %241 = vmatpush3.bf16.msra.mxu0 %v264_v6 }
  0x3d   :  { %242 = vmatprep.subr.bf16.mxu0 %v344_v0 }
  0x40   :  { %243 = vmatpush3.bf16.msra.mxu0 %v265_v7 }
  0x41   :  { %244 = vmatprep.subr.bf16.mxu0 %v344_v0 }
  0x44   :  { %245 = vmatpush3.bf16.msra.mxu0 %v266_v8 }
  0x47   :  { %247 = vmatmul.mubr.bf16.vlgmr.msra.gmra.mrb[0].mxu0 %v267_v9 }
 0x11a   :  { %v162_v10 = vpop.f32.mrb[0].mxu0 }
 0x11b   :  { %v248_v12 = vpop.f32.mrb[1].mxu0  ;;  %v185_v16 = vadd.f32 %v220_v11, %v162_v10 }
 0x11c   :  { %v165_v13 = vpop.f32.mrb[2].mxu0 }
 0x11d   :  { %v249_v15 = vpop.f32.mrb[3].mxu0  ;;  %v186_v17 = vadd.f32 %v220_v11, %v165_v13  ;;  %v189_v18 = vmul.f32 %v188_v14, %v185_v16 }
 0x11f   :  { %v190_v19 = vmul.f32 %v188_v14, %v186_v17  ;;  %191 = vst [vmem:[#allocation8] sm:$0xff] %v189_v18 }
 0x121   :  { %192 = vst [vmem:[#allocation8 + $0x8] sm:$0xff] %v190_v19 }
 0x122   :  { %323 = shalt.err (!%p320_p6)
}
 0x123   :  { %s324_s0 = scalar_lea.hbm %s420_s4, 256 }
 0x124   :  { %p325_p7 = scmp.ne.s32.totalorder %s420_s4, %s324_s0  ;;  %p328_p8 = scmp.lt.u32.totalorder %s324_s0, %s420_s4 }
 0x126   :  { %p330_p9 = pnand %p328_p8, %p325_p7 }
 0x128   :  { %333 = shalt.err (!%p330_p9)
}
 0x129   :  { %s347_s25 = smov 128   ;;  %s348_s26 = smov 8  }
 0x12a   :  { %204 = dma.vmem_to_hbm [thread:$0]  %s199_s18, 256, %s420_s4, [#allocation5], %s347_s25, %s347_s25, %s348_s26  }
 0x12b   :  { %338 = dma.done.wait [#allocation5], 256  }
 0x12c   :  { %339 = vsyncadd [#allocation5], 4294967040 }
 0x12d   :  { %208 = vsyncpa [#allocation4], 1 }
 0x12e   :  { %209 = vsyncpa [#allocation7], 1 }
 0x12f   :  { %210 = vsyncpa [#allocation5], 1 }

</bundles_post_ra>
